<compile_context>
chip_gen: v7x
topology: tpu7x:2x2x1
jax: 0.10.0
libtpu: 0.0.40
codegen_flags: <defaults>
</compile_context>

<pallas_src>
import jax
import jax.numpy as jnp
from jax.experimental import pallas as pl
from jax.experimental.pallas import tpu as pltpu


_VMEM_BUDGET = 36 * 1024 * 1024      # tile budget; kernel runs with a 48 MiB scoped limit


def _grouped_expert_kernel(gid_ref,      # SMEM prefetch: (max_tiles,) per-tile expert id
                           nreal_ref,    # SMEM prefetch: (1,) number of real (non-dummy) tiles
                           x_ref,        # (TM, TK) activation tile (compute dtype)
                           w_ref,        # (TK, TN) weight tile of this tile's expert
                           b_ref,        # (1, TN)  f32 bias slice of this tile's expert
                           o_ref,        # (TM, TN) output tile
                           acc_ref):     # (TM, TN) f32 accumulator scratch
    m = pl.program_id(0)
    k = pl.program_id(2)
    is_real = m < nreal_ref[0]

    @pl.when(jnp.logical_and(is_real, k == 0))
    def _init():
        acc_ref[...] = jnp.zeros_like(acc_ref)

    @pl.when(is_real)
    def _accumulate():
        acc_ref[...] += jnp.dot(x_ref[...], w_ref[...],
                                preferred_element_type=jnp.float32)

    @pl.when(jnp.logical_and(is_real, k == pl.num_programs(2) - 1))
    def _store():
        o_ref[...] = (acc_ref[...] + b_ref[...]).astype(o_ref.dtype)


def _round_up(x, m):
    return ((x + m - 1) // m) * m


def _pick_tile(dim, max_tile):
    """Largest 128-multiple divisor of `dim` that is <= max_tile (or dim itself)."""
    if dim <= max_tile:
        return dim
    t = (max_tile // 128) * 128
    while t >= 128 and dim % t:
        t -= 128
    return t if t >= 128 else dim


def _vmem_estimate(tm, tk, tn, in_bytes, out_bytes):
    return (2 * tm * tk * in_bytes       # activation tile (double-buffered)
            + 2 * tk * tn * in_bytes     # weight tile (double-buffered)
            + 2 * tn * 4                 # bias tile
            + 2 * tm * tn * out_bytes    # output tile
            + tm * tn * 4)               # f32 accumulator scratch


def qkv_seperate_expert_forward(inp, fwd_expert_count, weight_t, bias, *,
                                tm=512, tn=None, tk=None,
                                compute_dtype=jnp.bfloat16, out_dtype=None):
    """Pallas grouped-GEMM forward of FMoELinear / QKVSeperateExpert.

    weight_t: (num_expert, in_dim, out_dim) -- already transposed / cached by the module.
    Precision contract: inputs and weights are computed in `compute_dtype` (default bf16)
    with f32 accumulation; the output dtype defaults to `compute_dtype` (halves HBM
    writeback). Pass compute_dtype=out_dtype=jnp.float32 for exact f32 module semantics.
    """
    n_tokens, in_dim = inp.shape
    num_expert, w_in, out_dim = weight_t.shape
    assert w_in == in_dim, f"weight_t must be (E, in_dim, out_dim); got {weight_t.shape}"
    out_dtype = compute_dtype if out_dtype is None else out_dtype

    # ---- tile selection (tile to feed the MXU; VMEM is not the binding constraint) ----
    tm = max(8, min(int(tm), _round_up(n_tokens, 8)))     # don't over-pad tiny batches
    in_bytes = jnp.dtype(compute_dtype).itemsize
    out_bytes = jnp.dtype(out_dtype).itemsize
    if tk is None:
        tk = in_dim                       # K grid of 1 -> same-expert weight-DMA dedup
    if tn is None:
        tn = out_dim                      # N grid of 1 too (when it fits): full dedup
        if _vmem_estimate(tm, tk, tn, in_bytes, out_bytes) > _VMEM_BUDGET:
            tn = _pick_tile(out_dim, 512)
    if _vmem_estimate(tm, tk, tn, in_bytes, out_bytes) > _VMEM_BUDGET:
        tk = _pick_tile(in_dim, 2048)
    if _vmem_estimate(tm, tk, tn, in_bytes, out_bytes) > _VMEM_BUDGET:
        tk = _pick_tile(in_dim, 512)
    assert out_dim % tn == 0 and in_dim % tk == 0, (out_dim, tn, in_dim, tk)
    assert (tn % 128 == 0 or tn == out_dim) and (tk % 128 == 0 or tk == in_dim), \
        f"lane-unaligned tiles tn={tn}, tk={tk}; pad out_dim/in_dim to multiples of 128"

    counts = fwd_expert_count.astype(jnp.int32)
    # Cheap sanity check of the fastmoe contract when counts are concrete.
    try:
        total = int(jnp.sum(counts))
    except Exception:
        total = None
    if total is not None and total != n_tokens:
        raise ValueError(f"sum(fwd_expert_count)={total} != n_tokens={n_tokens}")

    offsets = jnp.concatenate(
        [jnp.zeros((1,), jnp.int32), jnp.cumsum(counts)]).astype(jnp.int32)      # (E+1,)

    # ---- pad each expert segment to a TM multiple (static worst-case tile bound) ----
    tiles_per_expert = (counts + tm - 1) // tm
    tile_offsets = jnp.concatenate(
        [jnp.zeros((1,), jnp.int32), jnp.cumsum(tiles_per_expert)]).astype(jnp.int32)
    n_real_tiles = tile_offsets[num_expert:]                     # (1,) traced tile count
    max_tiles = (n_tokens + tm - 1) // tm + num_expert           # static upper bound
    n_padded = max_tiles * tm

    # Per padded tile: owning expert. Dummy trailing tiles reuse the LAST real tile's
    # expert so the weight BlockSpec index does not change -> no extra weight DMA.
    t_idx = jnp.arange(max_tiles, dtype=jnp.int32)
    gid_raw = jnp.sum(t_idx[:, None] >= tile_offsets[None, 1:], axis=1).astype(jnp.int32)
    last_t = jnp.maximum(n_real_tiles[0] - 1, 0)
    last_gid = jnp.minimum(gid_raw[last_t], num_expert - 1)
    group_ids = jnp.where(t_idx < n_real_tiles[0],
                          jnp.minimum(gid_raw, num_expert - 1),
                          last_gid).astype(jnp.int32)

    # Gather tokens into padded, tile-aligned order (cast first: halves gather bytes).
    # TODO(synk): feed per-tile row starts through scalar prefetch + an Element / manual
    # DMA activation BlockSpec to drop this extra HBM pass over the activations entirely.
    p_idx = jnp.arange(n_padded, dtype=jnp.int32)
    p_e = group_ids[p_idx // tm]
    local = p_idx - tile_offsets[p_e] * tm
    src = jnp.clip(offsets[p_e] + local, 0, n_tokens - 1)
    x_padded = jnp.take(inp.astype(compute_dtype), src, axis=0)   # (n_padded, in_dim)

    # Map original rows back to their padded positions (final gather).
    r_idx = jnp.arange(n_tokens, dtype=jnp.int32)
    r_e = jnp.minimum(jnp.sum(r_idx[:, None] >= offsets[None, 1:], axis=1),
                      num_expert - 1).astype(jnp.int32)
    back = tile_offsets[r_e] * tm + (r_idx - offsets[r_e])

    w_t = weight_t.astype(compute_dtype)        # no-op when the cached copy is already bf16
    b3 = bias.reshape(num_expert, 1, out_dim).astype(jnp.float32)

    grid = (max_tiles, out_dim // tn, in_dim // tk)

    grid_spec = pltpu.PrefetchScalarGridSpec(
        num_scalar_prefetch=2,
        grid=grid,
        in_specs=[
            pl.BlockSpec((tm, tk), lambda m, n, k, gid, nreal: (m, k)),            # x
            # TODO(synk): pipeline_mode=pl.Buffered(3) here can hide the weight-DMA burst
            # at expert boundaries (weigh the extra buffer against v7x's 64 MiB VMEM).
            pl.BlockSpec((pl.Squeezed(), tk, tn),
                         lambda m, n, k, gid, nreal: (gid[m], k, n)),              # weight[e]
            pl.BlockSpec((pl.Squeezed(), 1, tn),
                         lambda m, n, k, gid, nreal: (gid[m], 0, n)),              # bias[e]
        ],
        out_specs=pl.BlockSpec((tm, tn), lambda m, n, k, gid, nreal: (m, n)),
        scratch_shapes=[pltpu.VMEM((tm, tn), jnp.float32)],
    )

    y_padded = pl.pallas_call(
        _grouped_expert_kernel,
        out_shape=jax.ShapeDtypeStruct((n_padded, out_dim), out_dtype),
        grid_spec=grid_spec,
        compiler_params=pltpu.CompilerParams(
            dimension_semantics=("parallel", "parallel", "arbitrary"),
            vmem_limit_bytes=48 * 1024 * 1024),
    )(group_ids, n_real_tiles, x_padded, w_t, b3)

    # TODO(synk): fuse this back-gather into the downstream consumer to save one HBM pass.
    return jnp.take(y_padded, back, axis=0)


class QKVSeperateExpert:
    """JAX/Pallas port of the PyTorch module (FMoELinear expert); forward only."""

    def __init__(self, num_expert, in_dim, out_dim, bias=True, rank=0, args=None,
                 compute_dtype=jnp.bfloat16):
        key = jax.random.PRNGKey(0)
        kw, kb = jax.random.split(key)
        limit = (6.0 / in_dim) ** 0.5
        self.weight = jax.random.uniform(
            kw, (num_expert, out_dim, in_dim), jnp.float32, -limit, limit)
        if bias:
            self.bias = jax.random.uniform(
                kb, (num_expert, out_dim), jnp.float32, -0.01, 0.01)
        else:
            self.bias = jnp.zeros((num_expert, out_dim), jnp.float32)
        # Cached once (perf-review item): MXU-friendly (E, in_dim, out_dim) bf16 weights.
        self.compute_dtype = compute_dtype
        self.weight_t = jnp.swapaxes(self.weight, 1, 2).astype(compute_dtype)
        self.bias_f32 = self.bias.astype(jnp.float32)
        self.args = args
        self.expert_count = None
        self.loss = None

    def get_loss(self, clear=True):
        loss = self.loss
        if clear:
            self.loss = None
        return loss

    def get_expert_count(self):
        if self.args is not None and getattr(self.args, "load_expert_count", False):
            return self.expert_count
        return None

    def __call__(self, inp, fwd_expert_count):
        if self.args is not None and getattr(self.args, "load_expert_count", False):
            self.expert_count = fwd_expert_count
        return qkv_seperate_expert_forward(
            inp, fwd_expert_count, self.weight_t, self.bias_f32,
            compute_dtype=self.compute_dtype)


def _reference(inp, fwd_expert_count, weight, bias):
    """Pure-JAX reference (same bf16 input/weight rounding as the kernel, f32 accum)."""
    x = inp.astype(jnp.bfloat16).astype(jnp.float32)
    w = weight.astype(jnp.bfloat16).astype(jnp.float32)
    counts = [int(c) for c in fwd_expert_count]
    outs, start = [], 0
    for e, c in enumerate(counts):
        seg = x[start:start + c]
        outs.append(seg @ w[e].T + bias[e][None, :])
        start += c
    return jnp.concatenate(outs, axis=0)


if __name__ == "__main__":
    num_expert, in_dim, out_dim = 4, 128, 128
    n_tokens = 32

    class _Args:
        load_expert_count = True

    module = QKVSeperateExpert(num_expert, in_dim, out_dim, bias=True, args=_Args())

    key = jax.random.PRNGKey(0)
    inp = jax.random.normal(jax.random.fold_in(key, 1), (n_tokens, in_dim),
                            dtype=jnp.float32)
    fwd_expert_count = jnp.array([10, 6, 9, 7], dtype=jnp.int32)
    assert int(fwd_expert_count.sum()) == n_tokens

    out = module(inp, fwd_expert_count)
    out = jax.block_until_ready(out)

    ref = _reference(inp, fwd_expert_count, module.weight, module.bias)
    assert out.shape == (n_tokens, out_dim)
    max_err = float(jnp.max(jnp.abs(out.astype(jnp.float32) - ref)))
    # Output is bf16 by default (perf-review item): tolerance sized for bf16 rounding.
    assert max_err < 5e-2, f"mismatch vs reference (max err {max_err})"

    print("KERNEL_OK")
</pallas_src>

<mosaic_0001>
module attributes {stable_mosaic.version = 11 : i64} {
  func.func @_grouped_expert_kernel(%arg0: i32, %arg1: i32, %arg2: i32, %arg3: memref<5xi32, #tpu.memory_space<smem>>, %arg4: memref<1xi32, #tpu.memory_space<smem>>, %arg5: memref<32x128xbf16, #tpu.memory_space<vmem>>, %arg6: memref<1x128x128xbf16, #tpu.memory_space<vmem>>, %arg7: memref<1x1x128xf32, #tpu.memory_space<vmem>>, %arg8: memref<32x128xbf16, #tpu.memory_space<vmem>>, %arg9: memref<32x128xf32, #tpu.memory_space<vmem>>) attributes {dimension_semantics = [#tpu.dimension_semantics<parallel>, #tpu.dimension_semantics<parallel>, #tpu.dimension_semantics<arbitrary>], iteration_bounds = array<i64: 5, 1, 1>, scalar_prefetch = 2 : i64, scratch_operands = 1 : i64, tpu.core_type = #tpu.core_type<tc>, window_params = [{transform_indices = @transform_0, window_bounds = array<i64: 32, 128>}, {transform_indices = @transform_1, window_bounds = array<i64: 1, 128, 128>}, {transform_indices = @transform_2, window_bounds = array<i64: 1, 1, 128>}, {transform_indices = @transform_3, window_bounds = array<i64: 32, 128>}]} {
    %c0 = arith.constant 0 : index
    %0 = memref.load %arg4[%c0] : memref<1xi32, #tpu.memory_space<smem>>
    %1 = arith.cmpi slt, %arg0, %0 : i32
    %c0_i32 = arith.constant 0 : i32
    %2 = arith.cmpi eq, %arg2, %c0_i32 : i32
    %3 = arith.andi %1, %2 : i1
    %4 = arith.extui %3 : i1 to i32
    %c0_i32_0 = arith.constant 0 : i32
    %5 = arith.cmpi ne, %4, %c0_i32_0 : i32
    scf.if %5 {
      %cst = arith.constant 0.000000e+00 : f32
      %12 = vector.broadcast %cst : f32 to vector<32x128xf32>
      %c0_4 = arith.constant 0 : index
      %c0_5 = arith.constant 0 : index
      %13 = vector.load %arg9[%c0_4, %c0_5] : memref<32x128xf32, #tpu.memory_space<vmem>>, vector<32x128xf32>
      tpu.vector_store %arg9[%c0_4, %c0_5], %12 {strides = array<i32>} : memref<32x128xf32, #tpu.memory_space<vmem>>, vector<32x128xf32>,
    } else {
    }
    %6 = arith.extui %1 : i1 to i32
    %c0_i32_1 = arith.constant 0 : i32
    %7 = arith.cmpi ne, %6, %c0_i32_1 : i32
    scf.if %7 {
      %c0_4 = arith.constant 0 : index
      %c0_5 = arith.constant 0 : index
      %12 = vector.load %arg9[%c0_4, %c0_5] : memref<32x128xf32, #tpu.memory_space<vmem>>, vector<32x128xf32>
      %c0_6 = arith.constant 0 : index
      %c0_7 = arith.constant 0 : index
      %13 = vector.load %arg5[%c0_6, %c0_7] : memref<32x128xbf16, #tpu.memory_space<vmem>>, vector<32x128xbf16>
      %c0_8 = arith.constant 0 : index
      %c0_9 = arith.constant 0 : index
      %c0_10 = arith.constant 0 : index
      %14 = vector.load %arg6[%c0_8, %c0_9, %c0_10] : memref<1x128x128xbf16, #tpu.memory_space<vmem>>, vector<1x128x128xbf16>
      %15 = vector.shape_cast %14 : vector<1x128x128xbf16> to vector<128x128xbf16>
      %cst = arith.constant dense<0.000000e+00> : vector<32x128xf32>
      %16 = tpu.matmul %13, %15, %cst {dimension_numbers = #tpu.dot_dimension_numbers<[1], [0], [0], [1], [0, 0, 1, 1], [], []>} : vector<32x128xbf16>, vector<128x128xbf16>, vector<32x128xf32> -> vector<32x128xf32>
      %17 = arith.addf %12, %16 : vector<32x128xf32>
      %c0_11 = arith.constant 0 : index
      %c0_12 = arith.constant 0 : index
      %18 = vector.load %arg9[%c0_11, %c0_12] : memref<32x128xf32, #tpu.memory_space<vmem>>, vector<32x128xf32>
      tpu.vector_store %arg9[%c0_11, %c0_12], %17 {strides = array<i32>} : memref<32x128xf32, #tpu.memory_space<vmem>>, vector<32x128xf32>,
    } else {
    }
    %c0_i32_2 = arith.constant 0 : i32
    %8 = arith.cmpi eq, %arg2, %c0_i32_2 : i32
    %9 = arith.andi %1, %8 : i1
    %10 = arith.extui %9 : i1 to i32
    %c0_i32_3 = arith.constant 0 : i32
    %11 = arith.cmpi ne, %10, %c0_i32_3 : i32
    scf.if %11 {
      %c0_4 = arith.constant 0 : index
      %c0_5 = arith.constant 0 : index
      %12 = vector.load %arg9[%c0_4, %c0_5] : memref<32x128xf32, #tpu.memory_space<vmem>>, vector<32x128xf32>
      %c0_6 = arith.constant 0 : index
      %c0_7 = arith.constant 0 : index
      %c0_8 = arith.constant 0 : index
      %13 = vector.load %arg7[%c0_6, %c0_7, %c0_8] : memref<1x1x128xf32, #tpu.memory_space<vmem>>, vector<1x1x128xf32>
      %14 = vector.shape_cast %13 : vector<1x1x128xf32> to vector<1x128xf32>
      %15 = vector.broadcast %14 : vector<1x128xf32> to vector<32x128xf32>
      %16 = arith.addf %12, %15 : vector<32x128xf32>
      %17 = arith.truncf %16 : vector<32x128xf32> to vector<32x128xbf16>
      %c0_9 = arith.constant 0 : index
      %c0_10 = arith.constant 0 : index
      %18 = vector.load %arg8[%c0_9, %c0_10] : memref<32x128xbf16, #tpu.memory_space<vmem>>, vector<32x128xbf16>
      tpu.vector_store %arg8[%c0_9, %c0_10], %17 {strides = array<i32>} : memref<32x128xbf16, #tpu.memory_space<vmem>>, vector<32x128xbf16>,
    } else {
    }
    return
  }
  func.func @transform_0(%arg0: i32, %arg1: i32, %arg2: i32, %arg3: memref<5xi32, #tpu.memory_space<smem>>, %arg4: memref<1xi32, #tpu.memory_space<smem>>) -> (i32, i32) {
    %c0_i32 = arith.constant 0 : i32
    return %arg0, %arg2 : i32, i32
  }
  func.func @transform_1(%arg0: i32, %arg1: i32, %arg2: i32, %arg3: memref<5xi32, #tpu.memory_space<smem>>, %arg4: memref<1xi32, #tpu.memory_space<smem>>) -> (i32, i32, i32) {
    %0 = arith.index_cast %arg0 : i32 to index
    %1 = memref.load %arg3[%0] : memref<5xi32, #tpu.memory_space<smem>>
    %c0_i32 = arith.constant 0 : i32
    return %1, %arg2, %arg1 : i32, i32, i32
  }
  func.func @transform_2(%arg0: i32, %arg1: i32, %arg2: i32, %arg3: memref<5xi32, #tpu.memory_space<smem>>, %arg4: memref<1xi32, #tpu.memory_space<smem>>) -> (i32, i32, i32) {
    %0 = arith.index_cast %arg0 : i32 to index
    %1 = memref.load %arg3[%0] : memref<5xi32, #tpu.memory_space<smem>>
    %c0_i32 = arith.constant 0 : i32
    %c0_i32_0 = arith.constant 0 : i32
    return %1, %c0_i32, %arg1 : i32, i32, i32
  }
  func.func @transform_3(%arg0: i32, %arg1: i32, %arg2: i32, %arg3: memref<5xi32, #tpu.memory_space<smem>>, %arg4: memref<1xi32, #tpu.memory_space<smem>>) -> (i32, i32) {
    %c0_i32 = arith.constant 0 : i32
    return %arg0, %arg1 : i32, i32
  }
}

</mosaic_0001>

<bundles_post_ra>
// kernel: tpu_custom_call.1
= control target key start
LH: loop header
LB: loop body
LE: loop exit
PB: predicated region body
PF: predicated region fallthrough
CT: control target
= control target key end

     0   :  { %s1420_s0 = inlined_call_operand.vmem [shape: s32[5], index: 0, kind: input, shape index: {}]   ;;  %s1421_s1 = inlined_call_operand.<no memory space> [shape: s32[1], index: 1, kind: input, shape index: {}]   ;;  %s1422_s2 = inlined_call_operand.hbm [shape: bf16[160,128], index: 2, kind: input, shape index: {}]   ;;  %s1423_s3 = inlined_call_operand.hbm [shape: bf16[4,128,128], index: 3, kind: input, shape index: {}]   ;;  %s1424_s4 = inlined_call_operand.vmem [shape: f32[4,1,128], index: 4, kind: input, shape index: {}]   ;;  %s1425_s5 = inlined_call_operand.hbm [shape: bf16[160,128], index: 5, kind: output, shape index: {}]  }
   0x1   :  { %1435 = sst [smem:[#allocation20_spill]] %s1422_s2  ;;  %s10_s20 = sshll.u32 %s1420_s0, 4  ;;  %s11_s20 = int_to_ptr.vmem [resolvable:$true] %s10_s20 }
   0x2   :  { %14 = sst [smem:[#allocation5]] %s1421_s1  ;;  %s839_s23 = scalar_lea.vmem %s11_s20, 16 }
   0x3   :  { %p840_p0 = scmp.ne.s32.totalorder %s11_s20, %s839_s23  ;;  %p844_p1 = scmp.lt.s32.totalorder %s11_s20, %s11_s20 }
   0x4   :  { %p845_p2 = scmp.lt.s32.totalorder %s839_s23, %s839_s23 }
   0x6   :  { %p846_p3 = por %p845_p2, %p844_p1 }
   0x8   :  { %p847_p4 = pnand %p846_p3, %p840_p0 }
   0xa   :  { %850 = shalt.err (!%p847_p4)  }
   0xb   :  { %s1025_s24 = smov [#allocation4]  }
   0xc   :  { %13 = dma.vmem_to_smem %s11_s20, 16, %s1025_s24, [#allocation3] }
   0xd   :  { %975 = dma.done.wait [#allocation3], 16 }
   0xe   :  { %976 = vsyncadd [#allocation3], 4294967280 }
   0xf   :  { %16 = sfence }
  0x10   :  { %17 = vsyncpa [#allocation7], 0 }
  0x11   :  { %19 = vsyncpa [#allocation7 + $0x1], 0 }
  0x12   :  { %20 = vsyncpa [#allocation10], 0 }
  0x13   :  { %22 = vsyncpa [#allocation10 + $0x1], 0 }
  0x14   :  { %23 = vsyncpa [#allocation8], 0 }
  0x15   :  { %25 = vsyncpa [#allocation8 + $0x1], 0  ;;  %s1070_s0 = smov 0   ;;  %s1072_s1 = smov 0  }
  0x16   :  { %s1074_s25 = smov 0   ;;  %s1076_s26 = smov 0  }
  0x17   :  { %s1078_s27 = smov 0   ;;  %s1080_s28 = smov 0  }
  0x18   :  { %s1082_s29 = smov 0   ;;  %s1084_s30 = smov 0  }
  0x19   :  { %s1086_s6 = smov 0  }
  0x1a LB: > { %1436 = sst [smem:[#allocation18_spill]] %s1019_s30  ;;  %s643_s7 = sadd.s32 4294967295, %s1023_s6   ;;  %s1023_s6 = sphi %s1086_s6, %s31_s6   ;;  %s1019_s30 = sphi %s1084_s30, %s1460_s30   ;;  %s1015_s29 = sphi %s1082_s29, %s1459_s29   ;;  %s1011_s28 = sphi %s1080_s28, %s1466_s28   ;;  %s1007_s27 = sphi %s1078_s27, %s1465_s27   ;;  %s1003_s26 = sphi %s1076_s26, %s1464_s26   ;;  %s999_s25 = sphi %s1074_s25, %s1463_s25   ;;  %s995_s1 = sphi %s1072_s1, %s1462_s1   ;;  %s991_s0 = sphi %s1070_s0, %s1461_s0  }
  0x1b   : > { %s644_s8 = sadd.s32 4294967294, %s1023_s6   ;;  %s50_s9 = sadd.s32 1, %s1019_s30 }
  0x1c   : > { %s59_s10 = sadd.s32 1, %s1011_s28  ;;  %p52_p5 = scmp.ge.s32.totalorder %s50_s9, 5 }
  0x1d   : > { %p66_p6 = scmp.ne.s32.totalorder %s1011_s28, %s1007_s27  ;;  %p1428_p7 = scmp.eq.s32.totalorder %s1023_s6, 0 }
  0x1e   : > { %p72_p8 = scmp.ne.s32.totalorder %s1007_s27, %s1003_s26  ;;  %s1468_s9 = smov (%p52_p5, %s50_s9), 0 }
  0x1f   : > { %1437 = sst [smem:[#allocation19_spill]] %s1468_s9  ;;  %p1131_p9 = por %p1428_p7, %p66_p6 }
  0x20   : > { %p1135_p10 = scmp.eq.s32.totalorder %s643_s7, 0  ;;  %s54_s13 = ssub.s32 %s1019_s30, %s1468_s9 }
  0x21   : > { %s1142_s14 = sld [smem:[#allocation4 + %s1019_s30]]  ;;  %p57_p11 = scmp.eq.s32.totalorder %s54_s13, 0 }
  0x22   : > { %p1149_p12 = por %p1135_p10, %p72_p8  ;;  %s1154_s16 = sld [smem:[#allocation4 + %s1468_s9]] }
  0x23   : > { %p160_p13 = scmp.eq.s32.totalorder %s643_s7, 4  ;;  %p166_p1 = scmp.eq.s32.totalorder %s644_s8, 4 }
  0x24   : > { %s1440_s15 = scalar_select %p1149_p12, 1, 0 }
  0x25   : > { %s1157_s17 = scalar_select %p57_p11, %s1011_s28, %s59_s10  }
  0x26   : > { %p1162_p0 = por %p160_p13, %p66_p6  ;;  %p1427_p2 = scmp.lt.s32.totalorder %s1023_s6, 5 }
  0x27   : > { %p1170_p3 = por %p166_p1, %p72_p8  ;;  %s186_s20 = sand.u32 1, %s1011_s28  }
  0x28   : > { %s1441_s18 = scalar_select %p1162_p0, 1, 0 }
  0x29   : > { %s1442_s19 = scalar_select %p1170_p3, 1, 0 }
  0x2a   : > { %s647_s21 = sshll.u32 %s186_s20, 4  ;;  %s679_s22 = sshll.u32 %s1019_s30, 8 }
  0x2b   : > { %s1443_s2 = sld [smem:[#allocation20_spill]]  ;;  %s190_s10 = scalar_lea.vmem [#allocation6], %s647_s21 }
  0x2c   : > { %s198_s8 = sshll.u32 %s190_s10, 4  ;;  %p1187_p4 = pnand %p1427_p2, %p1131_p9  ;;  %s1181_s8 = int_to_ptr.vmem [resolvable:$true] %s198_s8 }
  0x2d   : > { %s1192_s23 = scalar_lea.sflag [#allocation7], %s186_s20 }
  0x2e   : > { %p853_p8 = pneg %p1187_p4 }
  0x31   : > { %s1179_s7 = scalar_lea.hbm %s1443_s2, %s679_s22  ;;  %s856_s24 = scalar_lea.hbm %s1443_s2, 1280 }
  0x32   : > { %s851_s22 = scalar_lea.hbm %s1179_s7, 256  ;;  %p857_p9 = scmp.lt.u32.totalorder %s1179_s7, %s1443_s2 }
  0x33   : > { %p852_p6 = scmp.ne.s32.totalorder %s1179_s7, %s851_s22  ;;  %p858_p1 = scmp.lt.u32.totalorder %s856_s24, %s851_s22 }
  0x34   : > { %p860_p7 = scmp.lt.u32.totalorder %s851_s22, %s1179_s7 }
  0x35   : > { %p854_p11 = pnand %p853_p8, %p852_p6  ;;  %p859_p2 = por %p858_p1, %p857_p9 }
  0x37   : > { %p855_p13 = pneg %p854_p11  ;;  %p861_p5 = por %p860_p7, %p859_p2 }
  0x39   : > { %p862_p3 = pnand %p861_p5, %p855_p13 }
  0x3b   : > { %865 = shalt.err (!%p862_p3)
}
  0x3c   : > { %s866_s20 = scalar_lea.vmem %s1181_s8, 256  ;;  %s1026_s21 = smov [#allocation6]  }
  0x3d   : > { %p867_p6 = scmp.ne.s32.totalorder %s1181_s8, %s866_s20  ;;  %s871_s11 = sshll.u32 %s1026_s21, 4  ;;  %s872_s11 = int_to_ptr.vmem [resolvable:$false] %s871_s11 }
  0x3e   : > { %s873_s9 = scalar_lea.vmem %s872_s11, 512  ;;  %p874_p12 = scmp.lt.s32.totalorder %s1181_s8, %s872_s11 }
  0x3f   : > { %p869_p11 = pnand %p867_p6, %p853_p8  ;;  %p875_p9 = scmp.lt.s32.totalorder %s873_s9, %s866_s20 }
  0x41   : > { %p870_p0 = pneg %p869_p11  ;;  %p876_p1 = por %p875_p9, %p874_p12 }
  0x43   : > { %p877_p7 = pnand %p876_p1, %p870_p0 }
  0x45   : > { %880 = shalt.err (!%p877_p7)
}
  0x46   : > { %s1431_s22 = smov 64   ;;  %s1432_s24 = smov 4  }
  0x47   : > { %739 = dma.hbm_to_vmem [thread:$0]  (!%p1187_p4), %s1179_s7, 256, %s1181_s8, %s1192_s23, %s1431_s22, %s1431_s22, %s1432_s24  }
  0x48   : > { %p242_p12 = scmp.lt.s32.totalorder %s1023_s6, 6  ;;  %p1445_p0 = scmp.ge.s32.totalorder %s1023_s6, 1 }
  0x49   : > { %s84_s20 = ssub.s32 %s1142_s14, %s1154_s16  ;;  %s91_s21 = sadd.s32 1, %s999_s25 }
  0x4a   : > { %p1226_p2 = pnand %p1445_p0, %p242_p12  ;;  %p89_p3 = scmp.eq.s32.totalorder %s84_s20, 0 }
  0x4b   : > { %p98_p5 = scmp.ne.s32.totalorder %s999_s25, %s995_s1  ;;  %p104_p8 = scmp.ne.s32.totalorder %s995_s1, %s991_s0 }
  0x4c   : > { %s208_s11 = sand.u32 1, %s999_s25   ;;  %p1447_p13 = scmp.eq.s32.totalorder %s1023_s6, 0 }
  0x4d   : > { %s1239_s13 = scalar_select %p89_p3, %s999_s25, %s91_s21  }
  0x4e   : > { %p100_p6 = por %p98_p5, %p1447_p13  ;;  %p1245_p4 = por %p104_p8, %p1135_p10 }
  0x4f   : > { %s650_s8 = sshll.u32 %s208_s11, 6  ;;  %p1449_p11 = scmp.lt.s32.totalorder %s1023_s6, 5 }
  0x50   : > { %s1448_s7 = scalar_select %p1245_p4, 1, 0 }
  0x51   : > { %p1251_p9 = pnand %p1449_p11, %p100_p6  ;;  %p1451_p1 = pmov %p1449_p11 }
  0x52   : > { %s729_s14 = scalar_select %p100_p6, [#allocation4], [#allocation12] }
  0x53   : > { %s730_s0 = scalar_select %p100_p6, %s1019_s30, 0 }
  0x54   : > { %s1470_s14 = smov (!%p1451_p1, %s729_s14), [#allocation13]  ;;  %p1452_p7 = pmov %p1451_p1 }
  0x55   : > { %s212_s12 = scalar_lea.vmem [#allocation9], %s650_s8  ;;  %s1267_s2 = scalar_lea.sflag [#allocation10], %s208_s11 }
  0x56   : > { %s1472_s0 = smov (!%p1452_p7, %s730_s0), 0  ;;  %s223_s9 = sshll.u32 %s212_s12, 4  ;;  %s1260_s9 = int_to_ptr.vmem [resolvable:$true] %s223_s9 }
  0x57   : > { %s213_s16 = sld [smem:[%s1470_s14 + %s1472_s0]]  ;;  %p883_p12 = pneg %p1251_p9 }
  0x58   : > { %s886_s22 = scalar_lea.hbm %s1423_s3, 4096 }
  0x5d   : > { %s680_s20 = sshll.u32 %s213_s16, 10 }
  0x5e   : > { %s1265_s24 = scalar_lea.hbm %s1423_s3, %s680_s20 }
  0x5f   : > { %s881_s30 = scalar_lea.hbm %s1265_s24, 1024  ;;  %p887_p5 = scmp.lt.u32.totalorder %s1265_s24, %s1423_s3 }
  0x60   : > { %p882_p10 = scmp.ne.s32.totalorder %s1265_s24, %s881_s30  ;;  %p888_p8 = scmp.lt.u32.totalorder %s886_s22, %s881_s30 }
  0x61   : > { %p890_p6 = scmp.lt.u32.totalorder %s881_s30, %s1265_s24 }
  0x62   : > { %p884_p0 = pnand %p883_p12, %p882_p10  ;;  %p889_p13 = por %p888_p8, %p887_p5 }
  0x64   : > { %p885_p3 = pneg %p884_p0  ;;  %p891_p11 = por %p890_p6, %p889_p13 }
  0x66   : > { %p892_p1 = pnand %p891_p11, %p885_p3 }
  0x68   : > { %895 = shalt.err (!%p892_p1)
}
  0x69   : > { %s896_s11 = scalar_lea.vmem %s1260_s9, 1024  ;;  %s1029_s12 = smov [#allocation9]  }
  0x6a   : > { %p897_p7 = scmp.ne.s32.totalorder %s1260_s9, %s896_s11  ;;  %s901_s20 = sshll.u32 %s1029_s12, 4  ;;  %s902_s20 = int_to_ptr.vmem [resolvable:$false] %s901_s20 }
  0x6b   : > { %s903_s21 = scalar_lea.vmem %s902_s20, 2048  ;;  %p904_p4 = scmp.lt.s32.totalorder %s1260_s9, %s902_s20 }
  0x6c   : > { %p899_p10 = pnand %p897_p7, %p883_p12  ;;  %p905_p5 = scmp.lt.s32.totalorder %s903_s21, %s896_s11 }
  0x6e   : > { %p900_p0 = pneg %p899_p10  ;;  %p906_p8 = por %p905_p5, %p904_p4 }
  0x70   : > { %p907_p13 = pnand %p906_p8, %p900_p0 }
  0x72   : > { %910 = shalt.err (!%p907_p13)
}
  0x73   : > { %s1453_s30 = smov 4   ;;  %s1454_s8 = smov 64  }
  0x74   : > { %744 = dma.hbm_to_vmem [thread:$0]  (!%p1251_p9), %s1265_s24, 1024, %s1260_s9, %s1267_s2, %s1454_s8, %s1454_s8, %s1453_s30  }
  0x75   : > { %246 = sbr.rel (%p1226_p2) target bundleno = 435 (0x1b3), region = 32  ;;  %s1301_s14 = sand.u32 (!%p1226_p2), 1, %s1007_s27  }
  0x76   : > { %s654_s22 = sshll.u32 (!%p1226_p2), %s1301_s14, 4  ;;  %s249_s0 = scalar_lea.sflag (!%p1226_p2), [#allocation7], %s1301_s14 }
  0x77   : > { %s1305_s16 = scalar_lea.vmem (!%p1226_p2), [#allocation6], %s654_s22  ;;  %p1455_p4 = scmp.ne.s32.totalorder (!%p1226_p2), %s1440_s15, 0 }
  0x7c   : > { %978 = dma.done.wait (%p1455_p4), %s249_s0, 256  }
  0x7d   : > { %980 = vsyncadd (%p1455_p4), %s249_s0, 4294967040  ;;  %s257_s2 = sand.u32 1, %s995_s1   ;;  %p1456_p2 = scmp.ne.s32.totalorder %s1448_s7, 0 }
  0x7e   : > { %s655_s24 = sshll.u32 %s257_s2, 6  ;;  %s258_s10 = scalar_lea.sflag [#allocation10], %s257_s2 }
  0x7f   : > { %s1312_s23 = scalar_lea.vmem [#allocation9], %s655_s24 }
  0x80   : > { %982 = dma.done.wait (%p1456_p2), %s258_s10, 1024  }
  0x81   : > { %984 = vsyncadd (%p1456_p2), %s258_s10, 4294966272  ;;  %s299_s9 = sld [smem:[#allocation4 + %s1015_s29]]  ;;  %s1329_s21 = scalar_lea.vmem [#allocation11], %s654_s22 }
  0x82   : > { %s1319_s11 = sld [smem:[#allocation5]] }
  0x87   : > { %p300_p9 = scmp.lt.s32.totalorder %s299_s9, 3 }
  0x88   : > { %p310_p12 = scmp.lt.s32.totalorder %s1015_s29, %s1319_s11 }
  0x89   : > { %s1474_s9 = smov (!%p300_p9, %s299_s9), 3  ;;  %v1030_v0 = vmov (%p310_p12), 0.0  }
  0x8a   : > { %s305_s20 = scalar_lea.vmem %s1424_s4, %s1474_s9  ;;  %315 = sbr.rel (!%p310_p12) target bundleno = 145 (0x91), region = 44  ;;  %316 = vst [vmem:[#allocation2] sm:$0xff] (%p310_p12), %v1030_v0  ;;  %317 = vst [vmem:[#allocation2 + $0x8] sm:$0xff] (%p310_p12), %v1030_v0 }
  0x8b   : > { %318 = vst [vmem:[#allocation2 + $0x10] sm:$0xff] (%p310_p12), %v1030_v0  ;;  %319 = vst [vmem:[#allocation2 + $0x18] sm:$0xff] (%p310_p12), %v1030_v0 }
  0x91 PF: > { %p658_p3 = scmp.ge.s32.totalorder %s1015_s29, %s1319_s11 }
  0x92   : > { %v829_v1 = vld [vmem:[%s1312_s23] sm:$0xff] (!%p658_p3)   ;;  %v830_v2 = vld [vmem:[%s1312_s23 + $0x8] sm:$0xff] (!%p658_p3)   ;;  %v831_v3 = vld [vmem:[%s1312_s23 + $0x10] sm:$0xff] (!%p658_p3)  }
  0x93   : > { %322 = sbr.rel (%p658_p3) target bundleno = 397 (0x18d), region = 48  ;;  %708 = vmatprep.subr.bf16.mxu0 (!%p658_p3), %v829_v1  ;;  %v832_v4 = vld [vmem:[%s1312_s23 + $0x18] sm:$0xff] (!%p658_p3)   ;;  %v837_v5 = vld [vmem:[%s1305_s16] sm:$0xff] (!%p658_p3)   ;;  %v834_v7 = vld [vmem:[%s1312_s23 + $0x28] sm:$0xff] (!%p658_p3)  }
  0x94   : > { %709 = vmatpush3.bf16.msra.mxu0 (!%p658_p3), %v829_v1  ;;  %724 = vmatprep.mubr.bf16.mxu0 (!%p658_p3), %v837_v5  ;;  %v833_v6 = vld [vmem:[%s1312_s23 + $0x20] sm:$0xff] (!%p658_p3)   ;;  %v835_v8 = vld [vmem:[%s1312_s23 + $0x30] sm:$0xff] (!%p658_p3)   ;;  %v836_v9 = vld [vmem:[%s1312_s23 + $0x38] sm:$0xff] (!%p658_p3)  }
  0x95   : > { %710 = vmatprep.subr.bf16.mxu0 (!%p658_p3), %v830_v2  ;;  %v838_v10 = vld [vmem:[%s1305_s16 + $0x8] sm:$0xff] (!%p658_p3)   ;;  %v325_v11 = vld [vmem:[#allocation2 + $0x10] sm:$0xff] (!%p658_p3)  ;;  %v323_v12 = vld [vmem:[#allocation2] sm:$0xff] (!%p658_p3) }
  0x96   : > { %v326_v14 = vld [vmem:[#allocation2 + $0x18] sm:$0xff] (!%p658_p3)  ;;  %v324_v17 = vld [vmem:[#allocation2 + $0x8] sm:$0xff] (!%p658_p3) }
  0x98   : > { %711 = vmatpush3.bf16.msra.mxu0 (!%p658_p3), %v830_v2 }
  0x99   : > { %712 = vmatprep.subr.bf16.mxu0 (!%p658_p3), %v831_v3 }
  0x9c   : > { %713 = vmatpush3.bf16.msra.mxu0 %v831_v3 }
  0x9d   : > { %714 = vmatprep.subr.bf16.mxu0 %v832_v4 }
  0xa0   : > { %715 = vmatpush3.bf16.msra.mxu0 %v832_v4 }
  0xa1   : > { %716 = vmatprep.subr.bf16.mxu0 %v833_v6 }
  0xa4   : > { %717 = vmatpush3.bf16.msra.mxu0 %v833_v6 }
  0xa5   : > { %718 = vmatprep.subr.bf16.mxu0 %v834_v7 }
  0xa8   : > { %719 = vmatpush3.bf16.msra.mxu0 %v834_v7 }
  0xa9   : > { %720 = vmatprep.subr.bf16.mxu0 %v835_v8 }
  0xac   : > { %721 = vmatpush3.bf16.msra.mxu0 %v835_v8 }
  0xad   : > { %722 = vmatprep.subr.bf16.mxu0 %v836_v9 }
  0xb0   : > { %723 = vmatpush3.bf16.msra.mxu0 %v836_v9 }
  0xb3   : > { %725 = vmatmul.mubr.bf16.vlgmr.msra.gmra.mrb[0].mxu0 %v838_v10 }
 0x186   : > { %v726_v13 = vpop.f32.mrb[0].mxu0 }
 0x187   : > { %v458_v15 = vadd.f32 %v726_v13, %v325_v11  ;;  %v441_v16 = vpop.f32.mrb[1].mxu0 }
 0x188   : > { %v456_v18 = vadd.f32 %v441_v16, %v323_v12  ;;  %v727_v19 = vpop.f32.mrb[2].mxu0 }
 0x189   : > { %462 = vst [vmem:[#allocation2 + $0x10] sm:$0xff] %v458_v15  ;;  %v459_v20 = vadd.f32 %v727_v19, %v326_v14  ;;  %v444_v21 = vpop.f32.mrb[3].mxu0 }
 0x18a   : > { %460 = vst [vmem:[#allocation2] sm:$0xff] %v456_v18  ;;  %v457_v22 = vadd.f32 %v444_v21, %v324_v17 }
 0x18b   : > { %463 = vst [vmem:[#allocation2 + $0x18] sm:$0xff] %v459_v20 }
 0x18c   : > { %461 = vst [vmem:[#allocation2 + $0x8] sm:$0xff] %v457_v22 }
 0x18d PF: > { %465 = sbr.rel (!%p310_p12) target bundleno = 409 (0x199), region = 52  ;;  %v669_v25 = vld [vmem:[%s305_s20] ss:$0 sm:$0xff] (%p310_p12) }
 0x190   : > { %v468_v28 = vld [vmem:[#allocation2 + $0x10] sm:$0xff] (%p310_p12) }
 0x191   : > { %v466_v23 = vld [vmem:[#allocation2] sm:$0xff] (%p310_p12)  ;;  %v479_v30 = vadd.f32 (%p310_p12), %v669_v25, %v468_v28 }
 0x192   : > { %v477_v26 = vadd.f32 (%p310_p12), %v669_v25, %v466_v23  ;;  %v469_v29 = vld [vmem:[#allocation2 + $0x18] sm:$0xff] (%p310_p12) }
 0x193   : > { %v467_v24 = vld [vmem:[#allocation2 + $0x8] sm:$0xff] (%p310_p12)  ;;  %v480_v31 = vadd.f32 (%p310_p12), %v669_v25, %v469_v29 }
 0x194   : > { %v478_v27 = vadd.f32 %v669_v25, %v467_v24 }
 0x195   : > { %v695_v33 = vpack.c.bf16 %v480_v31, %v479_v30 }
 0x196   : > { %v690_v32 = vpack.c.bf16 %v478_v27, %v477_v26 }
 0x197   : > { %697 = vst [vmem:[%s1329_s21 + $0x8] sm:$0xff] %v695_v33  }
 0x198   : > { %691 = vst [vmem:[%s1329_s21] sm:$0xff] %v690_v32  }
 0x199 PF: > { %s686_s8 = sshll.u32 %s1015_s29, 8  ;;  %s516_s2 = sshll.u32 %s1329_s21, 4  ;;  %s1363_s2 = int_to_ptr.vmem [resolvable:$true] %s516_s2 }
 0x19a   : > { %s1360_s16 = scalar_lea.hbm %s1425_s5, %s686_s8  ;;  %s502_s24 = scalar_lea.sflag [#allocation8], %s1301_s14 }
 0x19b   : > { %s911_s10 = scalar_lea.vmem %s1363_s2, 256  ;;  %p1457_p11 = scmp.ne.s32.totalorder %s1441_s18, 0 }
 0x19c   : > { %p912_p6 = scmp.ne.s32.totalorder %s1363_s2, %s911_s10  ;;  %s1031_s23 = smov [#allocation11]  }
 0x19d   : > { %s915_s9 = sshll.u32 %s1031_s23, 4  ;;  %s916_s9 = int_to_ptr.vmem [resolvable:$false] %s915_s9 }
 0x19e   : > { %p913_p1 = pnand %p912_p6, %p1457_p11  ;;  %s917_s29 = scalar_lea.vmem %s916_s9, 512 }
 0x19f   : > { %p918_p10 = scmp.lt.s32.totalorder %s1363_s2, %s916_s9  ;;  %p919_p0 = scmp.lt.s32.totalorder %s917_s29, %s911_s10 }
 0x1a0   : > { %p914_p7 = pneg %p913_p1 }
 0x1a1   : > { %p920_p5 = por %p919_p0, %p918_p10 }
 0x1a3   : > { %p921_p8 = pnand %p920_p5, %p914_p7 }
 0x1a5   : > { %924 = shalt.err (!%p921_p8)
}
 0x1a6   : > { %s925_s11 = scalar_lea.hbm %s1360_s16, 256  ;;  %s929_s20 = scalar_lea.hbm %s1425_s5, 1280 }
 0x1a7   : > { %p926_p13 = scmp.ne.s32.totalorder %s1360_s16, %s925_s11  ;;  %p930_p9 = scmp.lt.u32.totalorder %s1360_s16, %s1425_s5 }
 0x1a8   : > { %p931_p12 = scmp.lt.u32.totalorder %s929_s20, %s925_s11  ;;  %p933_p6 = scmp.lt.u32.totalorder %s925_s11, %s1360_s16 }
 0x1a9   : > { %p927_p4 = pnand %p926_p13, %p1457_p11 }
 0x1aa   : > { %p932_p3 = por %p931_p12, %p930_p9 }
 0x1ab   : > { %p928_p2 = pneg %p927_p4 }
 0x1ac   : > { %p934_p1 = por %p933_p6, %p932_p3 }
 0x1ae   : > { %p935_p7 = pnand %p934_p1, %p928_p2 }
 0x1b0   : > { %938 = shalt.err (!%p935_p7)
}
 0x1b1   : > { %s1032_s30 = smov 64   ;;  %s1033_s8 = smov 4  }
 0x1b2   : > { %734 = dma.vmem_to_hbm [thread:$0]  (%p1457_p11), %s1363_s2, 256, %s1360_s16, %s502_s24, %s1032_s30, %s1032_s30, %s1033_s8  }
 0x1b3 PF: > { %p750_p10 = scmp.ge.s32.totalorder %s1023_s6, 2  ;;  %s531_s22 = sand.u32 1, %s1003_s26  }
 0x1b4   : > { %p1458_p0 = scmp.ne.s32.totalorder %s1442_s19, 0  ;;  %s532_s0 = scalar_lea.sflag [#allocation8], %s531_s22 }
 0x1b6   : > { %p746_p5 = pnand %p750_p10, %p1458_p0 }
 0x1b8   : > { %986 = dma.done.wait (!%p746_p5), %s532_s0, 256  }
 0x1b9   : > { %988 = vsyncadd (!%p746_p5), %s532_s0, 4294967040  ;;  %s31_s6 = sadd.s32 1, %s1023_s6   ;;  %s1459_s29 = sld [smem:[#allocation18_spill]] }
 0x1ba   : > { %p28_p8 = scmp.ge.s32.totalorder %s31_s6, 7   ;;  %s1460_s30 = sld [smem:[#allocation19_spill]] }
 0x1bb   : > { %s1461_s0 = smov %s995_s1  ;;  %s1462_s1 = smov %s999_s25 }
 0x1bc   : > { %s1463_s25 = smov %s1239_s13  ;;  %s1464_s26 = smov %s1007_s27 }
 0x1bd   : > { %s1465_s27 = smov %s1011_s28  ;;  %s1466_s28 = smov %s1157_s17 }
 0x1be   :  { %30 = sbr.rel (!%p28_p8) target bundleno = 26 (0x1a), region = 105 }
 0x1c5   :  { %537 = vsyncpa [#allocation7], 1 }
 0x1c6   :  { %539 = vsyncpa [#allocation7 + $0x1], 1 }
 0x1c7   :  { %540 = vsyncpa [#allocation10], 1 }
 0x1c8   :  { %542 = vsyncpa [#allocation10 + $0x1], 1 }
 0x1c9   :  { %543 = vsyncpa [#allocation8], 1 }
 0x1ca   :  { %545 = vsyncpa [#allocation8 + $0x1], 1 }

</bundles_post_ra>
